<compile_context>
chip_gen: v7x
topology: tpu7x:2x2x1
jax: 0.10.0
libtpu: 0.0.40
codegen_flags: <defaults>
</compile_context>

<pallas_src>
import functools

import numpy as np

import jax
import jax.numpy as jnp
from jax.experimental import pallas as pl
from jax.experimental.pallas import tpu as pltpu


def _round_up(x: int, m: int) -> int:
    return ((x + m - 1) // m) * m


# ---------------------------------------------------------------------------
# Pallas kernels: separable resize (bilinear image / nearest mask)
# ---------------------------------------------------------------------------
def _resize_kernel_fused(x_rows_out, img_ref, msk_ref, wxb_ref, wxn_ref,
                         wy_ref, x_out_ref, m_out_ref, tmp_ref):
    """Width pass (2 matmuls) + ONE block-diagonal height-pass matmul.

    img_ref : (C*h_in_p, w_in_p)  bf16, channel-folded padded crop
    msk_ref : (M*h_in_p, w_in_p)  bf16
    wxb/wxn : (w_in_p, tw)        bf16 width weights (this column tile)
    wy_ref  : ((C+M)*h_out_p, (C+M)*h_in_p) bf16 block-diag height weights
    tmp_ref : ((C+M)*h_in_p, tw)  bf16 VMEM scratch
    """
    ch_in = img_ref.shape[0]

    # ---- width pass: channel-folded rows keep the MXU row dimension busy ---
    tmp_ref[:ch_in, :] = jnp.dot(
        img_ref[...], wxb_ref[...],
        preferred_element_type=jnp.float32).astype(tmp_ref.dtype)
    tmp_ref[ch_in:, :] = jnp.dot(
        msk_ref[...], wxn_ref[...],
        preferred_element_type=jnp.float32).astype(tmp_ref.dtype)

    # ---- height pass: single block-diagonal matmul over all C+M channels ---
    y = jnp.dot(wy_ref[...], tmp_ref[...], preferred_element_type=jnp.float32)
    x_out_ref[...] = y[:x_rows_out, :].astype(x_out_ref.dtype)
    m_out_ref[...] = y[x_rows_out:, :].astype(m_out_ref.dtype)


def _resize_kernel_perchannel(C, M, img_ref, msk_ref, wxb_ref, wxn_ref,
                              wyb_ref, wyn_ref, x_out_ref, m_out_ref,
                              tmpx_ref, tmpm_ref):
    """Fallback for tall crops: per-channel height-pass matmuls are already
    large enough to fill the MXU, so skip the block-diagonal FLOP blow-up."""
    h_in = img_ref.shape[0] // C
    h_out = x_out_ref.shape[0] // C

    tmpx_ref[...] = jnp.dot(
        img_ref[...], wxb_ref[...],
        preferred_element_type=jnp.float32).astype(tmpx_ref.dtype)
    tmpm_ref[...] = jnp.dot(
        msk_ref[...], wxn_ref[...],
        preferred_element_type=jnp.float32).astype(tmpm_ref.dtype)

    wyb = wyb_ref[...]
    wyn = wyn_ref[...]
    for c in range(C):                        # static unroll, C is tiny
        x_out_ref[pl.ds(c * h_out, h_out), :] = jnp.dot(
            wyb, tmpx_ref[pl.ds(c * h_in, h_in), :],
            preferred_element_type=jnp.float32).astype(x_out_ref.dtype)
    for m in range(M):
        m_out_ref[pl.ds(m * h_out, h_out), :] = jnp.dot(
            wyn, tmpm_ref[pl.ds(m * h_in, h_in), :],
            preferred_element_type=jnp.float32).astype(m_out_ref.dtype)


def _resize_pallas(img2d, msk2d, wxb, wxn, wy, wyn, C, M, h_out_p, tw,
                   x_dtype, m_dtype, fuse):
    ch_in, w_in_p = img2d.shape
    mh_in = msk2d.shape[0]
    w_out_p = wxb.shape[1]
    n_wt = w_out_p // tw
    h_in_p = ch_in // C
    bs = 2  # bf16 bytes

    inv = lambda j: (0, 0)
    col = lambda j: (0, j)

    in_specs = [
        pl.BlockSpec((ch_in, w_in_p), inv),
        pl.BlockSpec((mh_in, w_in_p), inv),
        pl.BlockSpec((w_in_p, tw), col),
        pl.BlockSpec((w_in_p, tw), col),
        pl.BlockSpec(wy.shape, inv),
    ]
    operands = [img2d, msk2d, wxb, wxn, wy]
    if fuse:
        kernel = functools.partial(_resize_kernel_fused, C * h_out_p)
        scratch = [pltpu.VMEM(((C + M) * h_in_p, tw), jnp.bfloat16)]
        flops_h = 2 * ((C + M) * h_out_p) * ((C + M) * h_in_p) * w_out_p
        wy_bytes = wy.size * bs
    else:
        in_specs.append(pl.BlockSpec(wyn.shape, inv))
        operands.append(wyn)
        kernel = functools.partial(_resize_kernel_perchannel, C, M)
        scratch = [pltpu.VMEM((ch_in, tw), jnp.bfloat16),
                   pltpu.VMEM((mh_in, tw), jnp.bfloat16)]
        flops_h = 2 * (C + M) * h_out_p * h_in_p * w_out_p
        wy_bytes = (wy.size + wyn.size) * bs

    out_specs = (pl.BlockSpec((C * h_out_p, tw), col),
                 pl.BlockSpec((M * h_out_p, tw), col))
    out_shape = (jax.ShapeDtypeStruct((C * h_out_p, w_out_p), x_dtype),
                 jax.ShapeDtypeStruct((M * h_out_p, w_out_p), m_dtype))

    # ---- advisory cost estimate --------------------------------------------
    x_isz = jnp.dtype(x_dtype).itemsize
    m_isz = jnp.dtype(m_dtype).itemsize
    flops_w = 2 * (ch_in + mh_in) * w_in_p * w_out_p
    bytes_accessed = ((img2d.size + msk2d.size + wxb.size + wxn.size) * bs
                      + wy_bytes
                      + C * h_out_p * w_out_p * x_isz
                      + M * h_out_p * w_out_p * m_isz)
    cost = pl.CostEstimate(flops=int(flops_w + flops_h), transcendentals=0,
                           bytes_accessed=int(bytes_accessed))

    # ---- per-step VMEM footprint -> vmem limit with headroom ---------------
    vmem = 2 * (ch_in + mh_in) * w_in_p * bs        # invariant inputs (dbl-buf)
    vmem += 2 * 2 * w_in_p * tw * bs                # wx_b + wx_n tiles
    vmem += 2 * wy_bytes                            # height weights
    vmem += 2 * C * h_out_p * tw * x_isz            # output tiles (dbl-buf)
    vmem += 2 * M * h_out_p * tw * m_isz
    vmem += (C + M) * h_in_p * tw * bs              # scratch
    vmem += (C + M) * h_out_p * tw * 4              # fused f32 intermediate
    vmem_limit = int(min(max(vmem * 3 // 2 + (4 << 20), 16 << 20), 64 << 20))

    return pl.pallas_call(
        kernel,
        grid=(n_wt,),
        in_specs=in_specs,
        out_specs=out_specs,
        out_shape=out_shape,
        scratch_shapes=scratch,
        cost_estimate=cost,
        compiler_params=pltpu.CompilerParams(
            dimension_semantics=("parallel",),
            vmem_limit_bytes=vmem_limit,
        ),
    )(*operands)


# ---------------------------------------------------------------------------
# Host-side weight construction (torch F.interpolate semantics), lru_cached
# ---------------------------------------------------------------------------
def _bilinear_weights_np(in_size, out_size):
    """(in_size, out_size) weights matching torch bilinear, align_corners=False."""
    scale = in_size / out_size
    dst = np.arange(out_size, dtype=np.float64)
    src = np.maximum((dst + 0.5) * scale - 0.5, 0.0)
    lo = np.clip(np.floor(src).astype(np.int64), 0, in_size - 1)
    hi = np.minimum(lo + 1, in_size - 1)
    lam = (src - lo).astype(np.float32)
    w = np.zeros((in_size, out_size), np.float32)
    cols = np.arange(out_size)
    w[lo, cols] += 1.0 - lam
    w[hi, cols] += lam
    return w


def _nearest_indices_np(in_size, out_size):
    """torch 'nearest': src = floor(dst * in / out)."""
    dst = np.arange(out_size, dtype=np.float64)
    return np.clip(np.floor(dst * (in_size / out_size)).astype(np.int64),
                   0, in_size - 1)


def _nearest_weights_np(in_size, out_size):
    w = np.zeros((in_size, out_size), np.float32)
    w[_nearest_indices_np(in_size, out_size), np.arange(out_size)] = 1.0
    return w


@functools.lru_cache(maxsize=512)
def _width_weights_dev(in_size, out_size, in_pad, out_pad):
    wb = np.zeros((in_pad, out_pad), np.float32)
    wb[:in_size, :out_size] = _bilinear_weights_np(in_size, out_size)
    wn = np.zeros((in_pad, out_pad), np.float32)
    wn[:in_size, :out_size] = _nearest_weights_np(in_size, out_size)
    return (jnp.asarray(wb, dtype=jnp.bfloat16),
            jnp.asarray(wn, dtype=jnp.bfloat16))


@functools.lru_cache(maxsize=512)
def _height_weights_fused_dev(in_size, out_size, in_pad, out_pad, C, M):
    """Block-diagonal (C copies bilinear^T, M copies nearest^T) height weights."""
    wbT = _bilinear_weights_np(in_size, out_size).T   # (out, in)
    wnT = _nearest_weights_np(in_size, out_size).T
    K = C + M
    bd = np.zeros((K * out_pad, K * in_pad), np.float32)
    for k in range(K):
        blk = wbT if k < C else wnT
        bd[k * out_pad:k * out_pad + out_size,
           k * in_pad:k * in_pad + in_size] = blk
    return jnp.asarray(bd, dtype=jnp.bfloat16)


@functools.lru_cache(maxsize=512)
def _height_weights_split_dev(in_size, out_size, in_pad, out_pad):
    wb = np.zeros((out_pad, in_pad), np.float32)
    wb[:out_size, :in_size] = _bilinear_weights_np(in_size, out_size).T
    wn = np.zeros((out_pad, in_pad), np.float32)
    wn[:out_size, :in_size] = _nearest_weights_np(in_size, out_size).T
    return (jnp.asarray(wb, dtype=jnp.bfloat16),
            jnp.asarray(wn, dtype=jnp.bfloat16))


# ---------------------------------------------------------------------------
# Size math (torchvision F.resize) + host-side randint
# ---------------------------------------------------------------------------
def _resized_output_size(h, w, size, max_size):
    short, long = (w, h) if w <= h else (h, w)
    new_short, new_long = size, int(size * long / short)
    if max_size is not None and new_long > max_size:
        new_short, new_long = int(max_size * new_short / new_long), max_size
    if w <= h:
        return new_long, new_short     # (new_h, new_w)
    return new_short, new_long


def _randint(key, low, high):
    """torch.randint(low, high).item() analogue -> Python int (host-side)."""
    high = max(int(high), int(low) + 1)      # torch raises on empty range
    return int(jax.random.randint(key, (), int(low), high))


# ---------------------------------------------------------------------------
# Module
# ---------------------------------------------------------------------------
class DCropUpscalePallas:
    """JAX/Pallas port of COIGAN dCropUpscale.

    Random crop (sizes in [crop_size[0], min(dim, crop_size[1]))) followed by
    an aspect-preserving resize: image bilinear, mask nearest, longer edge
    capped at up_size (torchvision F.resize semantics). Crop box and target
    size are drawn host-side (like the torch module's .item() calls) because
    output shapes are data-dependent.
    """

    def __init__(self, crop_size, up_size):
        self.crop_size = (int(crop_size[0]), int(crop_size[1]))
        self.up_size = int(up_size)
        self.name = "dCropUpscale"

    def sample_params(self, key, H, W):
        k1, k2, k3, k4, k5 = jax.random.split(key, 5)
        box_h_max = min(H, self.crop_size[1])
        box_w_max = min(W, self.crop_size[1])
        size_h = _randint(k1, self.crop_size[0], box_h_max)
        size_w = _randint(k2, self.crop_size[0], box_w_max)
        # T.RandomCrop.get_params
        i = _randint(k3, 0, H - size_h + 1)
        j = _randint(k4, 0, W - size_w + 1)
        min_edge, max_edge = min(size_h, size_w), max(size_h, size_w)
        scale_factor = self.up_size / max_edge
        min_edge_up = int(min_edge * scale_factor)
        size = _randint(k5, min_edge, min_edge_up)
        new_h, new_w = _resized_output_size(size_h, size_w, size, self.up_size)
        return dict(i=i, j=j, size_h=size_h, size_w=size_w,
                    new_h=new_h, new_w=new_w)

    def apply(self, x, mask, p):
        C, M = x.shape[0], mask.shape[0]
        i, j = p["i"], p["j"]
        sh, sw = p["size_h"], p["size_w"]
        nh, nw = p["new_h"], p["new_w"]

        # Padded sizes: sublane dims to x16 (keeps bf16-packed channel
        # boundaries tile-aligned), lane dims to x128 (unmasked stores).
        h_in_p = _round_up(sh, 16)
        w_in_p = _round_up(sw, 128)
        h_out_p = _round_up(nh, 16)
        w_out_p = _round_up(nw, 128)

        # Width tiling: guarantee >=2 column tiles once the output is >=512
        # lanes wide so the "parallel" grid axis can shard across v7x's two
        # TensorCores; tiles stay multiples of 128 and divide w_out_p exactly.
        if w_out_p >= 512:
            tw = max(t for t in range(128, min(512, w_out_p // 2) + 1, 128)
                     if w_out_p % t == 0)
        else:
            tw = w_out_p

        # ---- crop (host-static indices), cast to bf16, pad, channel-fold ---
        x_c = x[:, i:i + sh, j:j + sw].astype(jnp.bfloat16)
        m_c = mask[:, i:i + sh, j:j + sw].astype(jnp.bfloat16)
        x_p = jnp.pad(x_c, ((0, 0), (0, h_in_p - sh), (0, w_in_p - sw)))
        m_p = jnp.pad(m_c, ((0, 0), (0, h_in_p - sh), (0, w_in_p - sw)))
        img2d = x_p.reshape(C * h_in_p, w_in_p)
        msk2d = m_p.reshape(M * h_in_p, w_in_p)

        # ---- host-cached bf16 resampling weights ---------------------------
        wxb, wxn = _width_weights_dev(sw, nw, w_in_p, w_out_p)
        fuse = (h_in_p <= 128 and
                ((C + M) * h_out_p) * ((C + M) * h_in_p) * 2 <= (8 << 20))
        if fuse:
            wy = _height_weights_fused_dev(sh, nh, h_in_p, h_out_p, C, M)
            wyn = None
        else:
            wy, wyn = _height_weights_split_dev(sh, nh, h_in_p, h_out_p)

        x2d, m2d = _resize_pallas(img2d, msk2d, wxb, wxn, wy, wyn, C, M,
                                  h_out_p, tw, x.dtype, mask.dtype, fuse)

        x_out = x2d.reshape(C, h_out_p, w_out_p)[:, :nh, :nw]
        m_out = m2d.reshape(M, h_out_p, w_out_p)[:, :nh, :nw]
        return x_out, m_out

    def __call__(self, key, x, mask):
        p = self.sample_params(key, x.shape[-2], x.shape[-1])
        return self.apply(x, mask, p)


# ---------------------------------------------------------------------------
if __name__ == "__main__":
    def run_and_check(module, x, mask, key):
        params = module.sample_params(key, x.shape[-2], x.shape[-1])
        x_out, m_out = module.apply(x, mask, params)
        jax.block_until_ready((x_out, m_out))

        i, j = params["i"], params["j"]
        sh, sw = params["size_h"], params["size_w"]
        nh, nw = params["new_h"], params["new_w"]
        C, M = x.shape[0], mask.shape[0]

        assert x_out.shape == (C, nh, nw) and x_out.dtype == x.dtype
        assert m_out.shape == (M, nh, nw) and m_out.dtype == mask.dtype
        assert max(nh, nw) <= module.up_size

        # Pure-JAX f32 reference with identical resampling math.
        x_c = x[:, i:i + sh, j:j + sw]
        m_c = mask[:, i:i + sh, j:j + sw]
        wwx = jnp.asarray(_bilinear_weights_np(sw, nw))
        wwy = jnp.asarray(_bilinear_weights_np(sh, nh))
        t = jnp.einsum('chw,wj->chj', x_c, wwx,
                       precision=jax.lax.Precision.HIGHEST)
        x_ref = jnp.einsum('chj,hi->cij', t, wwy,
                           precision=jax.lax.Precision.HIGHEST)
        ri = _nearest_indices_np(sh, nh)
        rj = _nearest_indices_np(sw, nw)
        m_ref = m_c[:, ri, :][:, :, rj]

        # bf16 operands => ~1e-2 relative error on the bilinear path.
        assert jnp.allclose(x_out, x_ref, atol=1e-1, rtol=0.0), "bilinear mismatch"
        assert jnp.array_equal(m_out, m_ref), "nearest mismatch"
        assert bool(jnp.all((m_out == 0.0) | (m_out == 1.0)))

    key = jax.random.PRNGKey(0)
    k_x1, k_m1, k_a1, k_x2, k_m2, k_a2 = jax.random.split(key, 6)

    # Test 1: small crop -> fused block-diagonal height-pass kernel.
    C, M, H, W = 3, 4, 16, 16
    x1 = jax.random.normal(k_x1, (C, H, W), dtype=jnp.float32)
    m1 = (jax.random.uniform(k_m1, (M, H, W)) > 0.5).astype(jnp.float32)
    run_and_check(DCropUpscalePallas(crop_size=(8, 14), up_size=32), x1, m1, k_a1)

    # Test 2: tall crop (> 128 rows) -> per-channel fallback kernel.
    C2, M2, H2, W2 = 3, 2, 160, 160
    x2 = jax.random.normal(k_x2, (C2, H2, W2), dtype=jnp.float32)
    m2 = (jax.random.uniform(k_m2, (M2, H2, W2)) > 0.5).astype(jnp.float32)
    run_and_check(DCropUpscalePallas(crop_size=(130, 160), up_size=192), x2, m2, k_a2)

    print("KERNEL_OK")
</pallas_src>

<mosaic_0001>
module attributes {stable_mosaic.version = 11 : i64} {
  func.func @_resize_kernel_fused(%arg0: i32, %arg1: memref<48x128xbf16, #tpu.memory_space<vmem>>, %arg2: memref<64x128xbf16, #tpu.memory_space<vmem>>, %arg3: memref<128x128xbf16, #tpu.memory_space<vmem>>, %arg4: memref<128x128xbf16, #tpu.memory_space<vmem>>, %arg5: memref<112x112xbf16, #tpu.memory_space<vmem>>, %arg6: memref<48x128xf32, #tpu.memory_space<vmem>>, %arg7: memref<64x128xf32, #tpu.memory_space<vmem>>, %arg8: memref<112x128xbf16, #tpu.memory_space<vmem>>) attributes {dimension_semantics = [#tpu.dimension_semantics<parallel>], iteration_bounds = array<i64: 1>, scalar_prefetch = 0 : i64, scratch_operands = 1 : i64, tpu.core_type = #tpu.core_type<tc>, window_params = [{pipeline_mode = #tpu.pipeline_mode<synchronous>, transform_indices = @transform_0, window_bounds = array<i64: 48, 128>}, {pipeline_mode = #tpu.pipeline_mode<synchronous>, transform_indices = @transform_1, window_bounds = array<i64: 64, 128>}, {transform_indices = @transform_2, window_bounds = array<i64: 128, 128>}, {transform_indices = @transform_3, window_bounds = array<i64: 128, 128>}, {pipeline_mode = #tpu.pipeline_mode<synchronous>, transform_indices = @transform_4, window_bounds = array<i64: 112, 112>}, {transform_indices = @transform_5, window_bounds = array<i64: 48, 128>}, {transform_indices = @transform_6, window_bounds = array<i64: 64, 128>}]} {
    %c0 = arith.constant 0 : index
    %c0_0 = arith.constant 0 : index
    %0 = vector.load %arg1[%c0, %c0_0] : memref<48x128xbf16, #tpu.memory_space<vmem>>, vector<48x128xbf16>
    %c0_1 = arith.constant 0 : index
    %c0_2 = arith.constant 0 : index
    %1 = vector.load %arg3[%c0_1, %c0_2] : memref<128x128xbf16, #tpu.memory_space<vmem>>, vector<128x128xbf16>
    %cst = arith.constant dense<0.000000e+00> : vector<48x128xf32>
    %2 = tpu.matmul %0, %1, %cst {dimension_numbers = #tpu.dot_dimension_numbers<[1], [0], [0], [1], [0, 0, 1, 1], [], []>} : vector<48x128xbf16>, vector<128x128xbf16>, vector<48x128xf32> -> vector<48x128xf32>
    %3 = arith.truncf %2 : vector<48x128xf32> to vector<48x128xbf16>
    %c0_3 = arith.constant 0 : index
    %c0_4 = arith.constant 0 : index
    %4 = vector.load %arg8[%c0_3, %c0_4] : memref<112x128xbf16, #tpu.memory_space<vmem>>, vector<48x128xbf16>
    tpu.vector_store %arg8[%c0_3, %c0_4], %3 {strides = array<i32>} : memref<112x128xbf16, #tpu.memory_space<vmem>>, vector<48x128xbf16>,
    %c0_5 = arith.constant 0 : index
    %c0_6 = arith.constant 0 : index
    %5 = vector.load %arg2[%c0_5, %c0_6] : memref<64x128xbf16, #tpu.memory_space<vmem>>, vector<64x128xbf16>
    %c0_7 = arith.constant 0 : index
    %c0_8 = arith.constant 0 : index
    %6 = vector.load %arg4[%c0_7, %c0_8] : memref<128x128xbf16, #tpu.memory_space<vmem>>, vector<128x128xbf16>
    %cst_9 = arith.constant dense<0.000000e+00> : vector<64x128xf32>
    %7 = tpu.matmul %5, %6, %cst_9 {dimension_numbers = #tpu.dot_dimension_numbers<[1], [0], [0], [1], [0, 0, 1, 1], [], []>} : vector<64x128xbf16>, vector<128x128xbf16>, vector<64x128xf32> -> vector<64x128xf32>
    %8 = arith.truncf %7 : vector<64x128xf32> to vector<64x128xbf16>
    %c48 = arith.constant 48 : index
    %c0_10 = arith.constant 0 : index
    %9 = vector.load %arg8[%c48, %c0_10] : memref<112x128xbf16, #tpu.memory_space<vmem>>, vector<64x128xbf16>
    tpu.vector_store %arg8[%c48, %c0_10], %8 {strides = array<i32>} : memref<112x128xbf16, #tpu.memory_space<vmem>>, vector<64x128xbf16>,
    %c0_11 = arith.constant 0 : index
    %c0_12 = arith.constant 0 : index
    %10 = vector.load %arg5[%c0_11, %c0_12] : memref<112x112xbf16, #tpu.memory_space<vmem>>, vector<112x112xbf16>
    %c0_13 = arith.constant 0 : index
    %c0_14 = arith.constant 0 : index
    %11 = vector.load %arg8[%c0_13, %c0_14] : memref<112x128xbf16, #tpu.memory_space<vmem>>, vector<112x128xbf16>
    %cst_15 = arith.constant dense<0.000000e+00> : vector<112x128xf32>
    %12 = tpu.matmul %10, %11, %cst_15 {dimension_numbers = #tpu.dot_dimension_numbers<[1], [0], [0], [1], [0, 0, 1, 1], [], []>} : vector<112x112xbf16>, vector<112x128xbf16>, vector<112x128xf32> -> vector<112x128xf32>
    %13 = vector.extract_strided_slice %12 {offsets = [0, 0], sizes = [48, 128], strides = [1, 1]} : vector<112x128xf32> to vector<48x128xf32>
    %c0_16 = arith.constant 0 : index
    %c0_17 = arith.constant 0 : index
    %14 = vector.load %arg6[%c0_16, %c0_17] : memref<48x128xf32, #tpu.memory_space<vmem>>, vector<48x128xf32>
    tpu.vector_store %arg6[%c0_16, %c0_17], %13 {strides = array<i32>} : memref<48x128xf32, #tpu.memory_space<vmem>>, vector<48x128xf32>,
    %15 = vector.extract_strided_slice %12 {offsets = [48, 0], sizes = [64, 128], strides = [1, 1]} : vector<112x128xf32> to vector<64x128xf32>
    %c0_18 = arith.constant 0 : index
    %c0_19 = arith.constant 0 : index
    %16 = vector.load %arg7[%c0_18, %c0_19] : memref<64x128xf32, #tpu.memory_space<vmem>>, vector<64x128xf32>
    tpu.vector_store %arg7[%c0_18, %c0_19], %15 {strides = array<i32>} : memref<64x128xf32, #tpu.memory_space<vmem>>, vector<64x128xf32>,
    return
  }
  func.func @transform_0(%arg0: i32) -> (i32, i32) {
    %c0_i32 = arith.constant 0 : i32
    %c0_i32_0 = arith.constant 0 : i32
    %c0_i32_1 = arith.constant 0 : i32
    return %c0_i32, %c0_i32_0 : i32, i32
  }
  func.func @transform_1(%arg0: i32) -> (i32, i32) {
    %c0_i32 = arith.constant 0 : i32
    %c0_i32_0 = arith.constant 0 : i32
    %c0_i32_1 = arith.constant 0 : i32
    return %c0_i32, %c0_i32_0 : i32, i32
  }
  func.func @transform_2(%arg0: i32) -> (i32, i32) {
    %c0_i32 = arith.constant 0 : i32
    %c0_i32_0 = arith.constant 0 : i32
    return %c0_i32, %arg0 : i32, i32
  }
  func.func @transform_3(%arg0: i32) -> (i32, i32) {
    %c0_i32 = arith.constant 0 : i32
    %c0_i32_0 = arith.constant 0 : i32
    return %c0_i32, %arg0 : i32, i32
  }
  func.func @transform_4(%arg0: i32) -> (i32, i32) {
    %c0_i32 = arith.constant 0 : i32
    %c0_i32_0 = arith.constant 0 : i32
    %c0_i32_1 = arith.constant 0 : i32
    return %c0_i32, %c0_i32_0 : i32, i32
  }
  func.func @transform_5(%arg0: i32) -> (i32, i32) {
    %c0_i32 = arith.constant 0 : i32
    %c0_i32_0 = arith.constant 0 : i32
    return %c0_i32, %arg0 : i32, i32
  }
  func.func @transform_6(%arg0: i32) -> (i32, i32) {
    %c0_i32 = arith.constant 0 : i32
    %c0_i32_0 = arith.constant 0 : i32
    return %c0_i32, %arg0 : i32, i32
  }
}

</mosaic_0001>

<bundles_post_ra>
// kernel: tpu_custom_call.1
= control target key start
LH: loop header
LB: loop body
LE: loop exit
PB: predicated region body
PF: predicated region fallthrough
CT: control target
= control target key end

     0   :  { %12 = vsyncpa [#allocation4], 0  ;;  %s1213_s0 = inlined_call_operand.hbm [shape: bf16[48,128], index: 0, kind: input, shape index: {}]   ;;  %s1214_s1 = inlined_call_operand.hbm [shape: bf16[64,128], index: 1, kind: input, shape index: {}]   ;;  %s1215_s2 = inlined_call_operand.hbm [shape: bf16[128,128], index: 2, kind: input, shape index: {}]   ;;  %s1216_s3 = inlined_call_operand.hbm [shape: bf16[128,128], index: 3, kind: input, shape index: {}]   ;;  %s1217_s4 = inlined_call_operand.hbm [shape: bf16[112,112], index: 4, kind: input, shape index: {}]   ;;  %s1218_s5 = inlined_call_operand.hbm [shape: f32[48,128], index: 5, kind: output, shape index: {0}]   ;;  %s1219_s6 = inlined_call_operand.hbm [shape: f32[64,128], index: 6, kind: output, shape index: {1}]  }
   0x1   :  { %13 = vsyncpa [#allocation7], 0 }
   0x2   :  { %14 = vsyncpa [#allocation10], 0 }
   0x3   :  { %15 = vsyncpa [#allocation5], 0 }
   0x4   :  { %16 = vsyncpa [#allocation14], 0  ;;  %s1004_s21 = smov [#allocation6]   ;;  %s1005_s23 = smov [#allocation9]  }
   0x5   :  { %s34_s22 = sshll.u32 %s1004_s21, 4  ;;  %s58_s24 = sshll.u32 %s1005_s23, 4  ;;  %s35_s22 = int_to_ptr.vmem [resolvable:$true] %s34_s22  ;;  %s1052_s24 = int_to_ptr.vmem [resolvable:$true] %s58_s24 }
   0x6   :  { %s840_s27 = scalar_lea.hbm %s1214_s1, 512 }
   0x7   :  { %p841_p0 = scmp.ne.s32.totalorder %s1214_s1, %s840_s27  ;;  %p844_p1 = scmp.lt.u32.totalorder %s840_s27, %s1214_s1 }
   0x9   :  { %p846_p2 = pnand %p844_p1, %p841_p0 }
   0xb   :  { %849 = shalt.err (!%p846_p2)
}
   0xc   :  { %s850_s8 = scalar_lea.vmem %s35_s22, 512  ;;  %p855_p4 = scmp.lt.s32.totalorder %s35_s22, %s35_s22 }
   0xd   :  { %p851_p3 = scmp.ne.s32.totalorder %s35_s22, %s850_s8  ;;  %p856_p5 = scmp.lt.s32.totalorder %s850_s8, %s850_s8 }
   0xf   :  { %p857_p6 = por %p856_p5, %p855_p4 }
  0x11   :  { %p858_p7 = pnand %p857_p6, %p851_p3 }
  0x13   :  { %861 = shalt.err (!%p858_p7)
}
  0x14   :  { %s1006_s9 = smov 64   ;;  %s1007_s10 = smov 4  }
  0x15   :  { %40 = dma.hbm_to_vmem [thread:$0]  %s1214_s1, 512, %s35_s22, [#allocation7], %s1006_s9, %s1006_s9, %s1007_s10  }
  0x16   :  { %s862_s15 = scalar_lea.hbm %s1216_s3, 1024 }
  0x17   :  { %p863_p8 = scmp.ne.s32.totalorder %s1216_s3, %s862_s15  ;;  %p866_p9 = scmp.lt.u32.totalorder %s862_s15, %s1216_s3 }
  0x19   :  { %p868_p10 = pnand %p866_p9, %p863_p8 }
  0x1b   :  { %871 = shalt.err (!%p868_p10)
}
  0x1c   :  { %s872_s20 = scalar_lea.vmem %s1052_s24, 1024  ;;  %p877_p12 = scmp.lt.s32.totalorder %s1052_s24, %s1052_s24 }
  0x1d   :  { %p873_p11 = scmp.ne.s32.totalorder %s1052_s24, %s872_s20  ;;  %p878_p13 = scmp.lt.s32.totalorder %s872_s20, %s872_s20 }
  0x1f   :  { %p879_p0 = por %p878_p13, %p877_p12 }
  0x21   :  { %p880_p1 = pnand %p879_p0, %p873_p11 }
  0x23   :  { %883 = shalt.err (!%p880_p1)
}
  0x24   :  { %64 = dma.hbm_to_vmem [thread:$0]  %s1216_s3, 1024, %s1052_s24, [#allocation10], %s1006_s9, %s1006_s9, %s1007_s10  }
  0x25   :  { %s1008_s22 = smov [#allocation3]   ;;  %s1009_s25 = smov [#allocation8]  }
  0x26   :  { %s22_s23 = sshll.u32 %s1008_s22, 4  ;;  %s46_s26 = sshll.u32 %s1009_s25, 4  ;;  %s23_s23 = int_to_ptr.vmem [resolvable:$true] %s22_s23  ;;  %s1089_s26 = int_to_ptr.vmem [resolvable:$true] %s46_s26 }
  0x27   :  { %s884_s29 = scalar_lea.hbm %s1213_s0, 384 }
  0x28   :  { %p885_p2 = scmp.ne.s32.totalorder %s1213_s0, %s884_s29  ;;  %p888_p3 = scmp.lt.u32.totalorder %s884_s29, %s1213_s0 }
  0x2a   :  { %p890_p4 = pnand %p888_p3, %p885_p2 }
  0x2c   :  { %893 = shalt.err (!%p890_p4)
}
  0x2d   :  { %s894_s3 = scalar_lea.vmem %s23_s23, 384  ;;  %p899_p6 = scmp.lt.s32.totalorder %s23_s23, %s23_s23 }
  0x2e   :  { %p895_p5 = scmp.ne.s32.totalorder %s23_s23, %s894_s3  ;;  %p900_p7 = scmp.lt.s32.totalorder %s894_s3, %s894_s3 }
  0x30   :  { %p901_p8 = por %p900_p7, %p899_p6 }
  0x32   :  { %p902_p9 = pnand %p901_p8, %p895_p5 }
  0x34   :  { %905 = shalt.err (!%p902_p9)
}
  0x35   :  { %28 = dma.hbm_to_vmem [thread:$0]  %s1213_s0, 384, %s23_s23, [#allocation4], %s1006_s9, %s1006_s9, %s1007_s10  }
  0x36   :  { %s906_s15 = scalar_lea.hbm %s1215_s2, 1024 }
  0x37   :  { %p907_p10 = scmp.ne.s32.totalorder %s1215_s2, %s906_s15  ;;  %p910_p11 = scmp.lt.u32.totalorder %s906_s15, %s1215_s2 }
  0x39   :  { %p912_p12 = pnand %p910_p11, %p907_p10 }
  0x3b   :  { %915 = shalt.err (!%p912_p12)
}
  0x3c   :  { %s916_s20 = scalar_lea.vmem %s1089_s26, 1024  ;;  %p921_p0 = scmp.lt.s32.totalorder %s1089_s26, %s1089_s26 }
  0x3d   :  { %p917_p13 = scmp.ne.s32.totalorder %s1089_s26, %s916_s20  ;;  %p922_p1 = scmp.lt.s32.totalorder %s916_s20, %s916_s20 }
  0x3f   :  { %p923_p2 = por %p922_p1, %p921_p0 }
  0x41   :  { %p924_p3 = pnand %p923_p2, %p917_p13 }
  0x43   :  { %927 = shalt.err (!%p924_p3)
}
  0x44   :  { %52 = dma.hbm_to_vmem [thread:$0]  %s1215_s2, 1024, %s1089_s26, [#allocation7], %s1006_s9, %s1006_s9, %s1007_s10  }
  0x45   :  { %s1010_s21 = smov [#allocation11]   ;;  %s928_s27 = scalar_lea.hbm %s1217_s4, 896 }
  0x46   :  { %s70_s22 = sshll.u32 %s1010_s21, 4  ;;  %p929_p4 = scmp.ne.s32.totalorder %s1217_s4, %s928_s27  ;;  %s71_s22 = int_to_ptr.vmem [resolvable:$true] %s70_s22 }
  0x47   :  { %p932_p5 = scmp.lt.u32.totalorder %s928_s27, %s1217_s4 }
  0x49   :  { %p934_p6 = pnand %p932_p5, %p929_p4 }
  0x4b   :  { %937 = shalt.err (!%p934_p6)
}
  0x4c   :  { %s938_s8 = scalar_lea.vmem %s71_s22, 896  ;;  %p943_p8 = scmp.lt.s32.totalorder %s71_s22, %s71_s22 }
  0x4d   :  { %p939_p7 = scmp.ne.s32.totalorder %s71_s22, %s938_s8  ;;  %p944_p9 = scmp.lt.s32.totalorder %s938_s8, %s938_s8 }
  0x4f   :  { %p945_p10 = por %p944_p9, %p943_p8 }
  0x51   :  { %p946_p11 = pnand %p945_p10, %p939_p7 }
  0x53   :  { %949 = shalt.err (!%p946_p11)
}
  0x54   :  { %76 = dma.hbm_to_vmem [thread:$0]  %s1217_s4, 896, %s71_s22, [#allocation10], %s1006_s9, %s1006_s9, %s1007_s10  }
  0x55   :  { %994 = dma.done.wait [#allocation4], 384  }
  0x56   :  { %995 = vsyncadd [#allocation4], 4294966912 }
  0x57   :  { %996 = dma.done.wait [#allocation7], 1536  }
  0x58   :  { %997 = vsyncadd [#allocation7], 4294965760 }
  0x59   :  { %998 = dma.done.wait [#allocation10], 1920  }
  0x5a   :  { %999 = vsyncadd [#allocation10], 4294965376  ;;  %v1011_v0 = vmov 0.0   ;;  %vm1012_vm0 = vmmov 0   ;;  %v810_v1 = vld [vmem:[#allocation8] sm:$0xff]   ;;  %v811_v2 = vld [vmem:[#allocation8 + $0x8] sm:$0xff]  }
  0x5b   :  { %703 = vmatprep.subr.bf16.mxu1 %v1011_v0  ;;  %719 = vmatprep.mubr.msk.bf16.mxu1 %vm1012_vm0, %v1011_v0  ;;  %v812_v3 = vld [vmem:[#allocation8 + $0x10] sm:$0xff]   ;;  %v813_v4 = vld [vmem:[#allocation8 + $0x18] sm:$0xff]   ;;  %v814_v5 = vld [vmem:[#allocation8 + $0x20] sm:$0xff]   ;;  %vm469_vm1 = vcmask 916480   ;;  %s1013_s4 = smov [#allocation12]  }
  0x5c   :  { %755 = vmatprep.subr.bf16.mxu0 %v1011_v0  ;;  %769 = vmatprep.mubr.msk.bf16.mxu0 %vm1012_vm0, %v1011_v0  ;;  %v815_v6 = vld [vmem:[#allocation8 + $0x28] sm:$0xff]   ;;  %v816_v7 = vld [vmem:[#allocation8 + $0x30] sm:$0xff]   ;;  %v817_v8 = vld [vmem:[#allocation8 + $0x38] sm:$0xff]   ;;  %s599_s9 = sshll.u32 %s1013_s4, 4  ;;  %s600_s9 = int_to_ptr.vmem [resolvable:$true] %s599_s9 }
  0x5d   :  { %704 = vmatpush3.bf16.msra.mxu1 %v810_v1  ;;  %v819_v9 = vld [vmem:[#allocation9] sm:$0xff]   ;;  %v818_v10 = vld [vmem:[#allocation3] sm:$0xff]   ;;  %v821_v12 = vld [vmem:[#allocation9 + $0x10] sm:$0xff]   ;;  %s950_s10 = scalar_lea.vmem %s600_s9, 768  ;;  %p955_p13 = scmp.lt.s32.totalorder %s600_s9, %s600_s9 }
  0x5e   :  { %705 = vmatprep.subr.bf16.mxu1 %v1011_v0  ;;  %v820_v11 = vld [vmem:[#allocation9 + $0x8] sm:$0xff]   ;;  %v823_v13 = vld [vmem:[#allocation3 + $0x8] sm:$0xff]   ;;  %v822_v14 = vld [vmem:[#allocation9 + $0x18] sm:$0xff]   ;;  %p951_p12 = scmp.ne.s32.totalorder %s600_s9, %s950_s10  ;;  %p956_p0 = scmp.lt.s32.totalorder %s950_s10, %s950_s10 }
  0x5f   :  { %v824_v15 = vld [vmem:[#allocation9 + $0x20] sm:$0xff]   ;;  %v826_v16 = vld [vmem:[#allocation3 + $0x10] sm:$0xff]   ;;  %v825_v18 = vld [vmem:[#allocation9 + $0x28] sm:$0xff]  }
  0x60   :  { %v829_v17 = vld [vmem:[#allocation6] sm:$0xff]   ;;  %v827_v19 = vld [vmem:[#allocation9 + $0x30] sm:$0xff]   ;;  %v828_v20 = vld [vmem:[#allocation9 + $0x38] sm:$0xff]   ;;  %p957_p1 = por %p956_p0, %p955_p13 }
  0x61   :  { %706 = vmatpush3.bf16.msra.mxu1 %v811_v2  ;;  %v830_v21 = vld [vmem:[#allocation6 + $0x8] sm:$0xff]   ;;  %v831_v22 = vld [vmem:[#allocation6 + $0x10] sm:$0xff]   ;;  %v832_v23 = vld [vmem:[#allocation6 + $0x18] sm:$0xff]  }
  0x62   :  { %707 = vmatprep.subr.bf16.mxu1 %v1011_v0  ;;  %v833_v51 = vld [vmem:[#allocation11] sm:$0xff]   ;;  %v834_v52 = vld [vmem:[#allocation11 + $0x8] sm:$0xff]   ;;  %v835_v53 = vld [vmem:[#allocation11 + $0x10] sm:$0xff]   ;;  %p958_p2 = pnand %p957_p1, %p951_p12 }
  0x63   :  { %v836_v54 = vld [vmem:[#allocation11 + $0x18] sm:$0xff]   ;;  %v837_v55 = vld [vmem:[#allocation11 + $0x20] sm:$0xff]   ;;  %v838_v56 = vld [vmem:[#allocation11 + $0x28] sm:$0xff]  }
  0x64   :  { %v839_v57 = vld [vmem:[#allocation11 + $0x30] sm:$0xff]  }
  0x65   :  { %708 = vmatpush3.bf16.msra.mxu1 %v812_v3 }
  0x66   :  { %709 = vmatprep.subr.bf16.mxu1 %v1011_v0 }
  0x69   :  { %710 = vmatpush3.bf16.msra.mxu1 %v813_v4 }
  0x6a   :  { %711 = vmatprep.subr.bf16.mxu1 %v1011_v0 }
  0x6d   :  { %712 = vmatpush3.bf16.msra.mxu1 %v814_v5 }
  0x6e   :  { %713 = vmatprep.subr.bf16.mxu1 %v1011_v0 }
  0x71   :  { %714 = vmatpush3.bf16.msra.mxu1 %v815_v6 }
  0x72   :  { %715 = vmatprep.subr.bf16.mxu1 %v1011_v0 }
  0x75   :  { %716 = vmatpush3.bf16.msra.mxu1 %v816_v7 }
  0x76   :  { %717 = vmatprep.subr.bf16.mxu1 %v1011_v0 }
  0x79   :  { %718 = vmatpush3.bf16.msra.mxu1 %v817_v8 }
  0x7a   :  { %731 = vmatprep.subr.bf16.mxu1 %v819_v9 }
  0x7c   :  { %720 = vmatmul.mubr.bf16.vlgmr.msra.gmra.mrb[0].mxu1 %v818_v10 }
  0x7d   :  { %732 = vmatpush3.bf16.msra.mxu1 %v819_v9  ;;  %723 = vmatprep.mubr.msk.bf16.mxu1 %vm1012_vm0, %v1011_v0 }
  0x7e   :  { %733 = vmatprep.subr.bf16.mxu1 %v820_v11 }
  0x81   :  { %734 = vmatpush3.bf16.msra.mxu1 %v820_v11 }
  0x82   :  { %735 = vmatprep.subr.bf16.mxu1 %v821_v12 }
  0x84   :  { %724 = vmatmul.mubr.bf16.gmra.mrb[4].mxu1 %v823_v13 }
  0x85   :  { %736 = vmatpush3.bf16.msra.mxu1 %v821_v12  ;;  %727 = vmatprep.mubr.msk.bf16.mxu1 %vm1012_vm0, %v1011_v0 }
  0x86   :  { %737 = vmatprep.subr.bf16.mxu1 %v822_v14 }
  0x89   :  { %738 = vmatpush3.bf16.msra.mxu1 %v822_v14 }
  0x8a   :  { %739 = vmatprep.subr.bf16.mxu1 %v824_v15 }
  0x8c   :  { %728 = vmatmul.mubr.bf16.gmra.mrb[8].mxu1 %v826_v16 }
  0x8d   :  { %740 = vmatpush3.bf16.msra.mxu1 %v824_v15  ;;  %747 = vmatprep.mubr.bf16.mxu1 %v829_v17 }
  0x8e   :  { %741 = vmatprep.subr.bf16.mxu1 %v825_v18 }
  0x91   :  { %742 = vmatpush3.bf16.msra.mxu1 %v825_v18 }
  0x92   :  { %743 = vmatprep.subr.bf16.mxu1 %v827_v19 }
  0x95   :  { %744 = vmatpush3.bf16.msra.mxu1 %v827_v19 }
  0x96   :  { %745 = vmatprep.subr.bf16.mxu1 %v828_v20 }
  0x99   :  { %746 = vmatpush3.bf16.msra.mxu1 %v828_v20 }
  0x9c   :  { %748 = vmatmul.mubr.bf16.vlgmr.msra.gmra.mrb[12].mxu1 %v830_v21 }
  0x9d   :  { %751 = vmatprep.mubr.bf16.mxu1 %v831_v22 }
  0xa4   :  { %752 = vmatmul.mubr.bf16.gmra.mrb[16].mxu1 %v832_v23 }
 0x14f   :  { %v215_v24 = vpop.f32.mrb[0].mxu1 }
 0x150   :  { %v721_v25 = vpop.f32.mrb[1].mxu1 }
 0x151   :  { %v218_v26 = vpop.f32.mrb[2].mxu1 }
 0x152   :  { %v238_v27 = vpack.c.bf16 %v218_v26, %v215_v24  ;;  %v722_v28 = vpop.f32.mrb[3].mxu1 }
 0x154   :  { %756 = vmatpush3.bf16.msra.mxu0 %v238_v27 }
 0x155   :  { %757 = vmatprep.subr.bf16.mxu0 %v1011_v0 }
 0x157   :  { %v223_v29 = vpop.f32.mrb[4].mxu1 }
 0x158   :  { %v725_v30 = vpop.f32.mrb[5].mxu1 }
 0x159   :  { %v226_v31 = vpop.f32.mrb[6].mxu1 }
 0x15a   :  { %v239_v32 = vpack.c.bf16 %v226_v31, %v223_v29  ;;  %v726_v33 = vpop.f32.mrb[7].mxu1 }
 0x15c   :  { %758 = vmatpush3.bf16.msra.mxu0 %v239_v32 }
 0x15d   :  { %759 = vmatprep.subr.bf16.mxu0 %v1011_v0 }
 0x15f   :  { %v231_v34 = vpop.f32.mrb[8].mxu1 }
 0x160   :  { %v729_v35 = vpop.f32.mrb[9].mxu1 }
 0x161   :  { %v234_v36 = vpop.f32.mrb[10].mxu1 }
 0x162   :  { %v240_v37 = vpack.c.bf16 %v234_v36, %v231_v34  ;;  %v730_v38 = vpop.f32.mrb[11].mxu1 }
 0x164   :  { %760 = vmatpush3.bf16.msra.mxu0 %v240_v37 }
 0x165   :  { %761 = vmatprep.subr.bf16.mxu0 %v1011_v0 }
 0x16f   :  { %v749_v39 = vpop.f32.mrb[12].mxu1 }
 0x170   :  { %v374_v40 = vpop.f32.mrb[13].mxu1 }
 0x171   :  { %v750_v41 = vpop.f32.mrb[14].mxu1 }
 0x172   :  { %v406_v42 = vpack.c.bf16 %v750_v41, %v749_v39  ;;  %v377_v43 = vpop.f32.mrb[15].mxu1 }
 0x173   :  { %v405_v44 = vpack.c.bf16 %v377_v43, %v374_v40 }
 0x175   :  { %762 = vmatpush3.bf16.msra.mxu0 %v405_v44 }
 0x176   :  { %763 = vmatprep.subr.bf16.mxu0 %v1011_v0 }
 0x177   :  { %v753_v45 = vpop.f32.mrb[16].mxu1 }
 0x178   :  { %v390_v46 = vpop.f32.mrb[17].mxu1 }
 0x179   :  { %v754_v47 = vpop.f32.mrb[18].mxu1  ;;  %764 = vmatpush3.bf16.msra.mxu0 %v406_v42 }
 0x17a   :  { %v408_v48 = vpack.c.bf16 %v754_v47, %v753_v45  ;;  %v393_v49 = vpop.f32.mrb[19].mxu1  ;;  %765 = vmatprep.subr.bf16.mxu0 %v1011_v0 }
 0x17b   :  { %v407_v50 = vpack.c.bf16 %v393_v49, %v390_v46 }
 0x17d   :  { %766 = vmatpush3.bf16.msra.mxu0 %v407_v50 }
 0x17e   :  { %767 = vmatprep.subr.bf16.mxu0 %v1011_v0 }
 0x181   :  { %768 = vmatpush3.bf16.msra.mxu0 %v408_v48 }
 0x184   :  { %770 = vmatmul.mubr.msk.bf16.vlgmr.msra.gmra.mrb[0].mxu0 %vm469_vm1, %v833_v51 }
 0x185   :  { %773 = vmatprep.mubr.msk.bf16.mxu0 %vm1012_vm0, %v1011_v0 }
 0x18c   :  { %774 = vmatmul.mubr.msk.bf16.gmra.mrb[4].mxu0 %vm469_vm1, %v834_v52 }
 0x18d   :  { %777 = vmatprep.mubr.msk.bf16.mxu0 %vm1012_vm0, %v1011_v0 }
 0x194   :  { %778 = vmatmul.mubr.msk.bf16.gmra.mrb[8].mxu0 %vm469_vm1, %v835_v53 }
 0x195   :  { %781 = vmatprep.mubr.msk.bf16.mxu0 %vm1012_vm0, %v1011_v0 }
 0x19c   :  { %782 = vmatmul.mubr.msk.bf16.gmra.mrb[12].mxu0 %vm469_vm1, %v836_v54 }
 0x19d   :  { %785 = vmatprep.mubr.msk.bf16.mxu0 %vm1012_vm0, %v1011_v0 }
 0x1a4   :  { %786 = vmatmul.mubr.msk.bf16.gmra.mrb[16].mxu0 %vm469_vm1, %v837_v55 }
 0x1a5   :  { %789 = vmatprep.mubr.msk.bf16.mxu0 %vm1012_vm0, %v1011_v0 }
 0x1ac   :  { %790 = vmatmul.mubr.msk.bf16.gmra.mrb[20].mxu0 %vm469_vm1, %v838_v56 }
 0x1ad   :  { %793 = vmatprep.mubr.msk.bf16.mxu0 %vm1012_vm0, %v1011_v0 }
 0x1b4   :  { %794 = vmatmul.mubr.msk.bf16.gmra.mrb[24].mxu0 %vm469_vm1, %v839_v57 }
 0x257   :  { %v525_v58 = vpop.f32.mrb[0].mxu0 }
 0x258   :  { %580 = vst [vmem:[#allocation12] sm:$0xff] %v525_v58  ;;  %v771_v59 = vpop.f32.mrb[1].mxu0 }
 0x259   :  { %v528_v60 = vpop.f32.mrb[2].mxu0 }
 0x25a   :  { %581 = vst [vmem:[#allocation12 + $0x8] sm:$0xff] %v528_v60  ;;  %v772_v61 = vpop.f32.mrb[3].mxu0 }
 0x25f   :  { %v533_v62 = vpop.f32.mrb[4].mxu0 }
 0x260   :  { %582 = vst [vmem:[#allocation12 + $0x10] sm:$0xff] %v533_v62  ;;  %v775_v63 = vpop.f32.mrb[5].mxu0 }
 0x261   :  { %v536_v1 = vpop.f32.mrb[6].mxu0 }
 0x262   :  { %583 = vst [vmem:[#allocation12 + $0x18] sm:$0xff] %v536_v1  ;;  %v776_v2 = vpop.f32.mrb[7].mxu0 }
 0x267   :  { %v541_v3 = vpop.f32.mrb[8].mxu0 }
 0x268   :  { %584 = vst [vmem:[#allocation12 + $0x20] sm:$0xff] %v541_v3  ;;  %v779_v0 = vpop.f32.mrb[9].mxu0 }
 0x269   :  { %v544_v4 = vpop.f32.mrb[10].mxu0 }
 0x26a   :  { %585 = vst [vmem:[#allocation12 + $0x28] sm:$0xff] %v544_v4  ;;  %v780_v5 = vpop.f32.mrb[11].mxu0 }
 0x26b   :  { %961 = shalt.err (!%p958_p2)
}
 0x26c   :  { %s962_s24 = scalar_lea.hbm %s1218_s5, 768 }
 0x26d   :  { %p963_p3 = scmp.ne.s32.totalorder %s1218_s5, %s962_s24  ;;  %p966_p4 = scmp.lt.u32.totalorder %s962_s24, %s1218_s5 }
 0x26f   :  { %p968_p5 = pnand %p966_p4, %p963_p3 }
 0x271   :  { %971 = shalt.err (!%p968_p5)
}
 0x272   :  { %s1014_s16 = smov 128   ;;  %s1015_s17 = smov 8   ;;  %v549_v6 = vpop.f32.mrb[12].mxu0 }
 0x273   :  { %605 = dma.vmem_to_hbm [thread:$0]  %s600_s9, 768, %s1218_s5, [#allocation5], %s1014_s16, %s1014_s16, %s1015_s17   ;;  %586 = vst [vmem:[#allocation13] sm:$0xff] %v549_v6  ;;  %v783_v7 = vpop.f32.mrb[13].mxu0 }
 0x274   :  { %v552_v8 = vpop.f32.mrb[14].mxu0  ;;  %s1016_s20 = smov [#allocation13]  }
 0x275   :  { %587 = vst [vmem:[#allocation13 + $0x8] sm:$0xff] %v552_v8  ;;  %v784_v9 = vpop.f32.mrb[15].mxu0  ;;  %s611_s5 = sshll.u32 %s1016_s20, 4  ;;  %s612_s5 = int_to_ptr.vmem [resolvable:$true] %s611_s5 }
 0x276   :  { %s972_s0 = scalar_lea.vmem %s612_s5, 1024  ;;  %p977_p7 = scmp.lt.s32.totalorder %s612_s5, %s612_s5 }
 0x277   :  { %v557_v10 = vpop.f32.mrb[16].mxu0  ;;  %p973_p6 = scmp.ne.s32.totalorder %s612_s5, %s972_s0  ;;  %p978_p8 = scmp.lt.s32.totalorder %s972_s0, %s972_s0 }
 0x278   :  { %588 = vst [vmem:[#allocation13 + $0x10] sm:$0xff] %v557_v10  ;;  %v787_v11 = vpop.f32.mrb[17].mxu0 }
 0x279   :  { %v560_v12 = vpop.f32.mrb[18].mxu0  ;;  %p979_p9 = por %p978_p8, %p977_p7 }
 0x27a   :  { %589 = vst [vmem:[#allocation13 + $0x18] sm:$0xff] %v560_v12  ;;  %v788_v13 = vpop.f32.mrb[19].mxu0 }
 0x27b   :  { %p980_p10 = pnand %p979_p9, %p973_p6 }
 0x27f   :  { %v565_v14 = vpop.f32.mrb[20].mxu0 }
 0x280   :  { %590 = vst [vmem:[#allocation13 + $0x20] sm:$0xff] %v565_v14  ;;  %v791_v15 = vpop.f32.mrb[21].mxu0 }
 0x281   :  { %v568_v16 = vpop.f32.mrb[22].mxu0 }
 0x282   :  { %591 = vst [vmem:[#allocation13 + $0x28] sm:$0xff] %v568_v16  ;;  %v792_v17 = vpop.f32.mrb[23].mxu0 }
 0x287   :  { %v573_v18 = vpop.f32.mrb[24].mxu0 }
 0x288   :  { %592 = vst [vmem:[#allocation13 + $0x30] sm:$0xff] %v573_v18  ;;  %v795_v19 = vpop.f32.mrb[25].mxu0 }
 0x289   :  { %v576_v20 = vpop.f32.mrb[26].mxu0 }
 0x28a   :  { %593 = vst [vmem:[#allocation13 + $0x38] sm:$0xff] %v576_v20  ;;  %v796_v21 = vpop.f32.mrb[27].mxu0 }
 0x28b   :  { %983 = shalt.err (!%p980_p10)
}
 0x28c   :  { %s984_s22 = scalar_lea.hbm %s1219_s6, 1024 }
 0x28d   :  { %p985_p11 = scmp.ne.s32.totalorder %s1219_s6, %s984_s22  ;;  %p988_p12 = scmp.lt.u32.totalorder %s984_s22, %s1219_s6 }
 0x28f   :  { %p990_p13 = pnand %p988_p12, %p985_p11 }
 0x291   :  { %993 = shalt.err (!%p990_p13)
}
 0x292   :  { %617 = dma.vmem_to_hbm [thread:$0]  %s612_s5, 1024, %s1219_s6, [#allocation14], %s1014_s16, %s1014_s16, %s1015_s17  }
 0x293   :  { %1000 = dma.done.wait [#allocation5], 768  }
 0x294   :  { %1001 = vsyncadd [#allocation5], 4294966528 }
 0x295   :  { %1002 = dma.done.wait [#allocation14], 1024  }
 0x296   :  { %1003 = vsyncadd [#allocation14], 4294966272 }
 0x297   :  { %624 = vsyncpa [#allocation4], 1 }
 0x298   :  { %625 = vsyncpa [#allocation7], 1 }
 0x299   :  { %626 = vsyncpa [#allocation10], 1 }
 0x29a   :  { %627 = vsyncpa [#allocation5], 1 }
 0x29b   :  { %628 = vsyncpa [#allocation14], 1 }

</bundles_post_ra>
